<compile_context>
chip_gen: v7x
topology: tpu7x:2x2x1
jax: 0.10.0
libtpu: 0.0.40
codegen_flags: <defaults>
</compile_context>

<pallas_src>
import jax
import jax.numpy as jnp
from jax.experimental import pallas as pl
from jax.experimental.pallas import tpu as pltpu


def _round_up(x, m):
    return (x + m - 1) // m * m


def _spec(shape, index_map, buffers=None):
    """BlockSpec with optional explicit pipeline depth (graceful fallback if
    pipeline_mode is unavailable in this JAX version)."""
    if buffers is not None and hasattr(pl, "Buffered"):
        try:
            return pl.BlockSpec(shape, index_map, pipeline_mode=pl.Buffered(buffers))
        except TypeError:
            pass
    return pl.BlockSpec(shape, index_map)


def _make_kernel(sum_col):
    """sum_col: static column index holding the folded adjacency row-sum
    (ones-column trick), or None to fall back to an in-kernel reduce."""
    use_ones_col = sum_col is not None

    def kernel(adj_ref, h_agg_ref, h_res_ref, w_ref, b_ref, out_ref,
               acc_ref, rsum_ref):
        # adj_ref:   (1, TN, TK)    bf16 row/col tile of adjacency
        # h_agg_ref: (1, TK, Din_p) bf16 neighbor features (contraction tile)
        # h_res_ref: (1, TN, Din_p) bf16 residual rows for this node tile
        # w_ref:     (Din_p, Dout_p) bf16, b_ref: (1, Dout_p) f32
        # acc_ref:   (TN, Din_p) f32 accumulator, rsum_ref: (TN, 1) f32
        k = pl.program_id(2)

        @pl.when(k == 0)
        def _init():
            acc_ref[...] = jnp.zeros_like(acc_ref)
            if not use_ones_col:
                rsum_ref[...] = jnp.zeros_like(rsum_ref)

        adj = adj_ref[0]
        # MXU: bf16 x bf16 -> f32 accumulate.  The trailing ones-column of h
        # makes acc[:, sum_col] the running adjacency row-sum for free.
        acc_ref[...] += jnp.dot(adj, h_agg_ref[0],
                                preferred_element_type=jnp.float32)
        if not use_ones_col:
            rsum_ref[...] += jnp.sum(adj.astype(jnp.float32), axis=1,
                                     keepdims=True)

        @pl.when(k == pl.num_programs(2) - 1)
        def _finalize():
            acc = acc_ref[...]                                  # (TN, Din_p) f32
            if use_ones_col:
                row_sum = acc[:, sum_col:sum_col + 1]           # (TN, 1) f32
            else:
                row_sum = rsum_ref[...]
            inv = pl.reciprocal(row_sum + 1e-6, approx=True)    # EUP slot
            h_prime = acc * inv
            combined = h_res_ref[0].astype(jnp.float32) + h_prime
            out = jnp.dot(combined.astype(jnp.bfloat16), w_ref[...],
                          preferred_element_type=jnp.float32)
            out = out + b_ref[...]
            out_ref[0] = jnp.maximum(out, 0.0).astype(out_ref.dtype)

    return kernel


def simple_gnn_layer(h, adj, weight_t, bias, *, tk=None):
    """Pallas forward of simple_gnn_layer.

    h:        (B, N, D_in)  float32 or bfloat16 node features
    adj:      (B, N, N)     float32 or bfloat16 adjacency (row i = edges into i)
    weight_t: (D_in, D_out) torch Linear weight, transposed
    bias:     (D_out,) or (1, D_out)
    tk:       optional neighbor (contraction) tile override (multiple of 128)
    returns:  (B, N, D_out) float32
    """
    B, N, Din = h.shape
    Dout = weight_t.shape[1]
    cdt = jnp.bfloat16                         # MXU operand dtype
    esz = jnp.dtype(cdt).itemsize

    Din_p = _round_up(Din, 128)
    Dout_p = _round_up(Dout, 128)
    sum_col = Din if Din < Din_p else None     # spare lane for the row-sum fold

    # --- tiling -------------------------------------------------------------
    # Node-row tile: keep the MXU M dimension at 256; large N goes to
    # contraction tiling instead of shrinking TN.
    TN = min(256, _round_up(N, 8))
    N_p = _round_up(N, TN)

    try:
        vmem_cap = int(pltpu.get_tpu_info().vmem_capacity_bytes)
    except Exception:
        vmem_cap = 64 << 20                    # v7x-safe default
    budget = vmem_cap * 3 // 4                 # ~48 MiB v7x, ~96 MiB v5e/v6e

    def vmem_need(tk_, nk_):
        return (2 * TN * tk_ * esz                             # adj tile (double)
                + (1 if nk_ == 1 else 2) * tk_ * Din_p * esz   # h (aggregation)
                + 2 * TN * Din_p * esz                         # h (residual rows)
                + Din_p * Dout_p * esz + Dout_p * 4            # W + bias (single)
                + 2 * TN * Dout_p * 4                          # out tile, f32
                + TN * Din_p * 4 + TN * 128 * 4)               # f32 scratch

    if tk is not None:
        assert tk == N or tk % 128 == 0, "tk must equal N or be a multiple of 128"
        TK = tk
    elif vmem_need(N, 1) <= budget:
        TK = N                                 # whole contraction resident
    else:
        TK = 512
        while TK > 128 and vmem_need(TK, 2) > budget:
            TK //= 2
    K_p = N if TK == N else _round_up(N, TK)
    nk = K_p // TK

    # --- host-side dtype / padding (adj only copied when a pad is required) --
    feat_pad = Din_p - Din
    if feat_pad:
        h_feat = jnp.concatenate(
            [h.astype(cdt),
             jnp.ones((B, N, 1), cdt),                         # row-sum column
             jnp.zeros((B, N, feat_pad - 1), cdt)], axis=-1)
    else:
        h_feat = h.astype(cdt)

    h_agg = h_feat if K_p == N else jnp.pad(h_feat, ((0, 0), (0, K_p - N), (0, 0)))
    h_res = h_feat if N_p == N else jnp.pad(h_feat, ((0, 0), (0, N_p - N), (0, 0)))
    adj_c = adj.astype(cdt)
    if N_p > N or K_p > N:
        adj_c = jnp.pad(adj_c, ((0, 0), (0, N_p - N), (0, K_p - N)))
    w_p = jnp.pad(weight_t, ((0, Din_p - Din), (0, Dout_p - Dout))).astype(cdt)
    b_p = jnp.pad(jnp.asarray(bias, jnp.float32).reshape(1, Dout),
                  ((0, 0), (0, Dout_p - Dout)))

    grid = (B, N_p // TN, nk)

    cost = pl.CostEstimate(
        flops=2 * B * N_p * K_p * Din_p + 2 * B * N_p * Din_p * Dout_p,
        transcendentals=B * N_p,
        bytes_accessed=(B * N_p * K_p * esz + B * (K_p + N_p) * Din_p * esz
                        + Din_p * Dout_p * esz + B * N_p * Dout_p * 4))

    vmem_limit = int(min(vmem_cap - (8 << 20),
                         max(vmem_need(TK, nk) + (8 << 20), 32 << 20)))

    out_p = pl.pallas_call(
        _make_kernel(sum_col),
        out_shape=jax.ShapeDtypeStruct((B, N_p, Dout_p), jnp.float32),
        grid_spec=pltpu.PrefetchScalarGridSpec(
            num_scalar_prefetch=0,
            grid=grid,
            in_specs=[
                _spec((1, TN, TK), lambda b, i, k: (b, i, k)),              # adj tile
                _spec((1, TK, Din_p), lambda b, i, k: (b, k, 0),
                      buffers=1 if nk == 1 else None),                      # h (agg)
                _spec((1, TN, Din_p), lambda b, i, k: (b, i, 0)),           # h (residual)
                _spec((Din_p, Dout_p), lambda b, i, k: (0, 0), buffers=1),  # W^T
                _spec((1, Dout_p), lambda b, i, k: (0, 0), buffers=1),      # bias
            ],
            out_specs=pl.BlockSpec((1, TN, Dout_p), lambda b, i, k: (b, i, 0)),
            scratch_shapes=[pltpu.VMEM((TN, Din_p), jnp.float32),
                            pltpu.VMEM((TN, 1), jnp.float32)],
        ),
        compiler_params=pltpu.CompilerParams(
            dimension_semantics=("parallel", "parallel", "arbitrary"),
            vmem_limit_bytes=vmem_limit,
        ),
        cost_estimate=cost,
    )(adj_c, h_agg, h_res, w_p, b_p)

    return out_p[:, :N, :Dout]


def reference(h, adj, weight_t, bias):
    # Pure-JAX port of the PyTorch module (same op order as the spec).
    row_sum = jnp.sum(adj, axis=2, keepdims=True) + 1e-6
    norm_adj = adj / row_sum
    h_prime = jnp.einsum("bij,bjd->bid", norm_adj, h)
    combined = h + h_prime
    out = combined @ weight_t + bias.reshape(1, 1, -1)
    return jnp.maximum(out, 0.0)


if __name__ == "__main__":
    key = jax.random.PRNGKey(0)
    keys = jax.random.split(key, 8)

    def make_case(kh, ka, kw, kb, B, N, Din, Dout):
        h = jax.random.normal(kh, (B, N, Din), dtype=jnp.float32)
        adj = jax.random.uniform(ka, (B, N, N), dtype=jnp.float32)
        bound = 1.0 / (Din ** 0.5)
        weight = jax.random.uniform(kw, (Dout, Din), minval=-bound, maxval=bound,
                                    dtype=jnp.float32)
        bias = jax.random.uniform(kb, (Dout,), minval=-bound, maxval=bound,
                                  dtype=jnp.float32)
        return h, adj, weight.T, bias

    def check(h, adj, weight_t, bias, **kw):
        # production path: adj/h shipped to the kernel already in bf16
        out = simple_gnn_layer(h.astype(jnp.bfloat16), adj.astype(jnp.bfloat16),
                               weight_t, bias, **kw)
        out = jax.block_until_ready(out)
        # reference on the same bf16-quantized operands the kernel consumes
        hq = h.astype(jnp.bfloat16).astype(jnp.float32)
        aq = adj.astype(jnp.bfloat16).astype(jnp.float32)
        wq = weight_t.astype(jnp.bfloat16).astype(jnp.float32)
        ref_q = reference(hq, aq, wq, bias)
        ref_f = reference(h, adj, weight_t, bias)
        assert out.shape == ref_f.shape
        assert jnp.allclose(out, ref_q, atol=3e-2, rtol=3e-2), "mismatch vs bf16 reference"
        assert jnp.allclose(out, ref_f, atol=1.5e-1, rtol=1.5e-1), "mismatch vs f32 reference"

    # 1) small graph batch: resident-contraction path (single k step)
    check(*make_case(*keys[:4], 2, 8, 32, 32))
    # 2) forced 128-wide neighbor tile: exercises the contraction-axis
    #    accumulator (multi-k) path with @pl.when init/finalize
    check(*make_case(*keys[4:], 2, 160, 32, 64), tk=128)

    print("KERNEL_OK")
</pallas_src>

<mosaic_0001>
module attributes {stable_mosaic.version = 11 : i64} {
  func.func @kernel(%arg0: i32, %arg1: i32, %arg2: i32, %arg3: memref<1x8x8xbf16, #tpu.memory_space<vmem>>, %arg4: memref<1x8x128xbf16, #tpu.memory_space<vmem>>, %arg5: memref<1x8x128xbf16, #tpu.memory_space<vmem>>, %arg6: memref<128x128xbf16, #tpu.memory_space<vmem>>, %arg7: memref<1x128xf32, #tpu.memory_space<vmem>>, %arg8: memref<1x8x128xf32, #tpu.memory_space<vmem>>, %arg9: memref<8x128xf32, #tpu.memory_space<vmem>>, %arg10: memref<8x1xf32, #tpu.memory_space<vmem>>) attributes {dimension_semantics = [#tpu.dimension_semantics<parallel>, #tpu.dimension_semantics<parallel>, #tpu.dimension_semantics<arbitrary>], iteration_bounds = array<i64: 2, 1, 1>, scalar_prefetch = 0 : i64, scratch_operands = 2 : i64, tpu.core_type = #tpu.core_type<tc>, window_params = [{transform_indices = @transform_0, window_bounds = array<i64: 1, 8, 8>}, {pipeline_mode = #tpu.pipeline_mode<synchronous>, transform_indices = @transform_1, window_bounds = array<i64: 1, 8, 128>}, {transform_indices = @transform_2, window_bounds = array<i64: 1, 8, 128>}, {pipeline_mode = #tpu.pipeline_mode<synchronous>, transform_indices = @transform_3, window_bounds = array<i64: 128, 128>}, {pipeline_mode = #tpu.pipeline_mode<synchronous>, transform_indices = @transform_4, window_bounds = array<i64: 1, 128>}, {transform_indices = @transform_5, window_bounds = array<i64: 1, 8, 128>}]} {
    %c0_i32 = arith.constant 0 : i32
    %0 = arith.cmpi eq, %arg2, %c0_i32 : i32
    %1 = arith.extui %0 : i1 to i32
    %c0_i32_0 = arith.constant 0 : i32
    %2 = arith.cmpi ne, %1, %c0_i32_0 : i32
    scf.if %2 {
      %cst_12 = arith.constant 0.000000e+00 : f32
      %14 = vector.broadcast %cst_12 : f32 to vector<8x128xf32>
      %c0_13 = arith.constant 0 : index
      %c0_14 = arith.constant 0 : index
      %15 = vector.load %arg9[%c0_13, %c0_14] : memref<8x128xf32, #tpu.memory_space<vmem>>, vector<8x128xf32>
      tpu.vector_store %arg9[%c0_13, %c0_14], %14 {strides = array<i32>} : memref<8x128xf32, #tpu.memory_space<vmem>>, vector<8x128xf32>,
    } else {
    }
    %c0 = arith.constant 0 : index
    %c0_1 = arith.constant 0 : index
    %c0_2 = arith.constant 0 : index
    %3 = vector.load %arg3[%c0, %c0_1, %c0_2] : memref<1x8x8xbf16, #tpu.memory_space<vmem>>, vector<1x8x8xbf16>
    %4 = vector.shape_cast %3 : vector<1x8x8xbf16> to vector<8x8xbf16>
    %c0_3 = arith.constant 0 : index
    %c0_4 = arith.constant 0 : index
    %5 = vector.load %arg9[%c0_3, %c0_4] : memref<8x128xf32, #tpu.memory_space<vmem>>, vector<8x128xf32>
    %c0_5 = arith.constant 0 : index
    %c0_6 = arith.constant 0 : index
    %c0_7 = arith.constant 0 : index
    %6 = vector.load %arg4[%c0_5, %c0_6, %c0_7] : memref<1x8x128xbf16, #tpu.memory_space<vmem>>, vector<1x8x128xbf16>
    %7 = vector.shape_cast %6 : vector<1x8x128xbf16> to vector<8x128xbf16>
    %cst = arith.constant dense<0.000000e+00> : vector<8x128xf32>
    %8 = tpu.matmul %4, %7, %cst {dimension_numbers = #tpu.dot_dimension_numbers<[1], [0], [0], [1], [0, 0, 1, 1], [], []>} : vector<8x8xbf16>, vector<8x128xbf16>, vector<8x128xf32> -> vector<8x128xf32>
    %9 = arith.addf %5, %8 : vector<8x128xf32>
    %c0_8 = arith.constant 0 : index
    %c0_9 = arith.constant 0 : index
    %10 = vector.load %arg9[%c0_8, %c0_9] : memref<8x128xf32, #tpu.memory_space<vmem>>, vector<8x128xf32>
    tpu.vector_store %arg9[%c0_8, %c0_9], %9 {strides = array<i32>} : memref<8x128xf32, #tpu.memory_space<vmem>>, vector<8x128xf32>,
    %c0_i32_10 = arith.constant 0 : i32
    %11 = arith.cmpi eq, %arg2, %c0_i32_10 : i32
    %12 = arith.extui %11 : i1 to i32
    %c0_i32_11 = arith.constant 0 : i32
    %13 = arith.cmpi ne, %12, %c0_i32_11 : i32
    scf.if %13 {
      %c0_12 = arith.constant 0 : index
      %c0_13 = arith.constant 0 : index
      %14 = vector.load %arg9[%c0_12, %c0_13] : memref<8x128xf32, #tpu.memory_space<vmem>>, vector<8x128xf32>
      %15 = vector.extract_strided_slice %14 {offsets = [0, 32], sizes = [8, 1], strides = [1, 1]} : vector<8x128xf32> to vector<8x1xf32>
      %cst_14 = arith.constant 9.99999997E-7 : f32
      %16 = vector.broadcast %cst_14 : f32 to vector<8x1xf32>
      %17 = arith.addf %15, %16 : vector<8x1xf32>
      %18 = tpu.reciprocal %17 {approx = true} : vector<8x1xf32> -> vector<8x1xf32>
      %19 = vector.broadcast %18 : vector<8x1xf32> to vector<8x128xf32>
      %20 = arith.mulf %14, %19 : vector<8x128xf32>
      %c0_15 = arith.constant 0 : index
      %c0_16 = arith.constant 0 : index
      %c0_17 = arith.constant 0 : index
      %21 = vector.load %arg5[%c0_15, %c0_16, %c0_17] : memref<1x8x128xbf16, #tpu.memory_space<vmem>>, vector<1x8x128xbf16>
      %22 = vector.shape_cast %21 : vector<1x8x128xbf16> to vector<8x128xbf16>
      %23 = arith.extf %22 : vector<8x128xbf16> to vector<8x128xf32>
      %24 = arith.addf %23, %20 : vector<8x128xf32>
      %25 = arith.truncf %24 : vector<8x128xf32> to vector<8x128xbf16>
      %c0_18 = arith.constant 0 : index
      %c0_19 = arith.constant 0 : index
      %26 = vector.load %arg6[%c0_18, %c0_19] : memref<128x128xbf16, #tpu.memory_space<vmem>>, vector<128x128xbf16>
      %cst_20 = arith.constant dense<0.000000e+00> : vector<8x128xf32>
      %27 = tpu.matmul %25, %26, %cst_20 {dimension_numbers = #tpu.dot_dimension_numbers<[1], [0], [0], [1], [0, 0, 1, 1], [], []>} : vector<8x128xbf16>, vector<128x128xbf16>, vector<8x128xf32> -> vector<8x128xf32>
      %c0_21 = arith.constant 0 : index
      %c0_22 = arith.constant 0 : index
      %28 = vector.load %arg7[%c0_21, %c0_22] : memref<1x128xf32, #tpu.memory_space<vmem>>, vector<1x128xf32>
      %29 = vector.broadcast %28 : vector<1x128xf32> to vector<8x128xf32>
      %30 = arith.addf %27, %29 : vector<8x128xf32>
      %cst_23 = arith.constant 0.000000e+00 : f32
      %31 = vector.broadcast %cst_23 : f32 to vector<8x128xf32>
      %32 = arith.maximumf %30, %31 : vector<8x128xf32>
      %c0_24 = arith.constant 0 : index
      %c0_25 = arith.constant 0 : index
      %c0_26 = arith.constant 0 : index
      %33 = vector.load %arg8[%c0_24, %c0_25, %c0_26] : memref<1x8x128xf32, #tpu.memory_space<vmem>>, vector<1x8x128xf32>
      %34 = vector.shape_cast %33 : vector<1x8x128xf32> to vector<8x128xf32>
      %35 = vector.shape_cast %32 : vector<8x128xf32> to vector<1x8x128xf32>
      tpu.vector_store %arg8[%c0_24, %c0_25, %c0_26], %35 {strides = array<i32>} : memref<1x8x128xf32, #tpu.memory_space<vmem>>, vector<1x8x128xf32>,
    } else {
    }
    return
  }
  func.func @transform_0(%arg0: i32, %arg1: i32, %arg2: i32) -> (i32, i32, i32) {
    %c0_i32 = arith.constant 0 : i32
    return %arg0, %arg1, %arg2 : i32, i32, i32
  }
  func.func @transform_1(%arg0: i32, %arg1: i32, %arg2: i32) -> (i32, i32, i32) {
    %c0_i32 = arith.constant 0 : i32
    %c0_i32_0 = arith.constant 0 : i32
    return %arg0, %arg2, %c0_i32 : i32, i32, i32
  }
  func.func @transform_2(%arg0: i32, %arg1: i32, %arg2: i32) -> (i32, i32, i32) {
    %c0_i32 = arith.constant 0 : i32
    %c0_i32_0 = arith.constant 0 : i32
    return %arg0, %arg1, %c0_i32 : i32, i32, i32
  }
  func.func @transform_3(%arg0: i32, %arg1: i32, %arg2: i32) -> (i32, i32) {
    %c0_i32 = arith.constant 0 : i32
    %c0_i32_0 = arith.constant 0 : i32
    %c0_i32_1 = arith.constant 0 : i32
    return %c0_i32, %c0_i32_0 : i32, i32
  }
  func.func @transform_4(%arg0: i32, %arg1: i32, %arg2: i32) -> (i32, i32) {
    %c0_i32 = arith.constant 0 : i32
    %c0_i32_0 = arith.constant 0 : i32
    %c0_i32_1 = arith.constant 0 : i32
    return %c0_i32, %c0_i32_0 : i32, i32
  }
  func.func @transform_5(%arg0: i32, %arg1: i32, %arg2: i32) -> (i32, i32, i32) {
    %c0_i32 = arith.constant 0 : i32
    %c0_i32_0 = arith.constant 0 : i32
    return %arg0, %arg1, %c0_i32 : i32, i32, i32
  }
}

</mosaic_0001>

<bundles_post_ra>
// kernel: tpu_custom_call.1
= control target key start
LH: loop header
LB: loop body
LE: loop exit
PB: predicated region body
PF: predicated region fallthrough
CT: control target
= control target key end

     0   :  { %s1378_s0 = inlined_call_operand.hbm [shape: bf16[2,8,8], index: 0, kind: input, shape index: {}]   ;;  %s1379_s1 = inlined_call_operand.hbm [shape: bf16[2,8,128], index: 1, kind: input, shape index: {}]   ;;  %s1380_s2 = inlined_call_operand.hbm [shape: bf16[2,8,128], index: 2, kind: input, shape index: {}]   ;;  %s1381_s3 = inlined_call_operand.hbm [shape: bf16[128,128], index: 3, kind: input, shape index: {}]   ;;  %s1382_s4 = inlined_call_operand.vmem [shape: f32[1,128], index: 4, kind: input, shape index: {}]   ;;  %s1383_s5 = inlined_call_operand.hbm [shape: f32[2,8,128], index: 5, kind: output, shape index: {}]  }
   0x1   :  { %1396 = sst [smem:[#allocation21_spill]] %s1378_s0 }
   0x2   :  { %1397 = sst [smem:[#allocation22_spill]] %s1379_s1 }
   0x3   :  { %10 = vsyncpa [#allocation5], 0 }
   0x4   :  { %12 = vsyncpa [#allocation5 + $0x1], 0 }
   0x5   :  { %13 = vsyncpa [#allocation8], 0 }
   0x6   :  { %14 = vsyncpa [#allocation6], 0 }
   0x7   :  { %16 = vsyncpa [#allocation6 + $0x1], 0  ;;  %s1091_s18 = smov 0   ;;  %s1093_s19 = smov 0  }
   0x8   :  { %s1095_s20 = smov 0   ;;  %s1097_s21 = smov 0  }
   0x9   :  { %s1099_s22 = smov 0   ;;  %s1101_s23 = smov 0  }
   0xa LB: > { %1398 = sst [smem:[#allocation17_spill]] %s1037_s20  ;;  %s1122_s24 = sadd.s32 4294967295, %s1049_s23   ;;  %s1049_s23 = sphi %s1101_s23, %s22_s23   ;;  %s1045_s22 = sphi %s1099_s22, %s1426_s22   ;;  %s1041_s21 = sphi %s1097_s21, %s1425_s21   ;;  %s1037_s20 = sphi %s1095_s20, %s1424_s20   ;;  %s1033_s19 = sphi %s1093_s19, %s1428_s19   ;;  %s1029_s18 = sphi %s1091_s18, %s1427_s18  }
   0xb   : > { %1399 = sst [smem:[#allocation18_spill]] %s1045_s22  ;;  %s672_s25 = sadd.s32 4294967294, %s1049_s23  }
   0xc   : > { %p65_p0 = scmp.ne.s32.totalorder %s1033_s19, %s1029_s18  ;;  %p1384_p1 = scmp.eq.s32.totalorder %s1122_s24, 0 }
   0xd   : > { %p195_p3 = scmp.eq.s32.totalorder %s672_s25, 1  ;;  %p673_p5 = scmp.ge.s32.totalorder %s1049_s23, 1 }
   0xe   : > { %p1131_p4 = por %p1384_p1, %p65_p0  ;;  %p202_p7 = scmp.lt.s32.totalorder %s1049_s23, 3 }
   0xf   : > { %p1136_p6 = por %p195_p3, %p65_p0  ;;  %s674_s28 = sshll.u32 %s1041_s21, 6 }
  0x10   : > { %s1400_s26 = scalar_select %p1131_p4, 1, 0 }
  0x11   : > { %s1401_s27 = scalar_select %p1136_p6, 1, 0 }
  0x12   : > { %p1142_p8 = pnand %p673_p5, %p202_p7  ;;  %s1403_s1 = sld [smem:[#allocation22_spill]] }
  0x13   : > { %s1051_s8 = smov [#allocation7]  }
  0x14   : > { %s1402_s29 = scalar_select %p1142_p8, 1, 0 }
  0x15   : > { %s218_s9 = sshll.u32 %s1051_s8, 4  ;;  %p749_p9 = pneg %p1142_p8  ;;  %s219_s9 = int_to_ptr.vmem [resolvable:$true] %s218_s9 }
  0x17   : > { %p1156_p11 = pnand %p749_p9, %p1131_p4  ;;  %p1162_p12 = pnand %p749_p9, %p1384_p1 }
  0x18   : > { %s1149_s7 = scalar_lea.hbm %s1403_s1, %s674_s28  ;;  %s842_s15 = scalar_lea.hbm %s1403_s1, 128 }
  0x19   : > { %s1405_s11 = scalar_select %p1162_p12, 1, 0 }
  0x1a   : > { %s837_s12 = scalar_lea.hbm %s1149_s7, 64  ;;  %p839_p0 = pneg %p1156_p11 }
  0x1b   : > { %p838_p13 = scmp.ne.s32.totalorder %s1149_s7, %s837_s12  ;;  %p843_p7 = scmp.lt.u32.totalorder %s1149_s7, %s1403_s1 }
  0x1c   : > { %p844_p9 = scmp.lt.u32.totalorder %s842_s15, %s837_s12  ;;  %p846_p1 = scmp.lt.u32.totalorder %s837_s12, %s1149_s7 }
  0x1d   : > { %p840_p3 = pnand %p839_p0, %p838_p13 }
  0x1e   : > { %p845_p10 = por %p844_p9, %p843_p7 }
  0x1f   : > { %p841_p5 = pneg %p840_p3 }
  0x20   : > { %p847_p2 = por %p846_p1, %p845_p10 }
  0x22   : > { %p848_p6 = pnand %p847_p2, %p841_p5 }
  0x24   : > { %851 = shalt.err (!%p848_p6)
}
  0x25   : > { %s852_s25 = scalar_lea.vmem %s219_s9, 64  ;;  %p860_p8 = scmp.lt.s32.totalorder %s219_s9, %s219_s9 }
  0x26   : > { %p853_p4 = scmp.ne.s32.totalorder %s219_s9, %s852_s25  ;;  %p861_p12 = scmp.lt.s32.totalorder %s852_s25, %s852_s25 }
  0x28   : > { %p855_p13 = pnand %p853_p4, %p839_p0  ;;  %p862_p7 = por %p861_p12, %p860_p8 }
  0x2a   : > { %p856_p3 = pneg %p855_p13 }
  0x2c   : > { %p863_p9 = pnand %p862_p7, %p856_p3 }
  0x2e   : > { %866 = shalt.err (!%p863_p9)
}
  0x2f   : > { %752 = dma.hbm_to_vmem [thread:$0]  (!%p1156_p11), %s1149_s7, 64, %s219_s9, [#allocation8]  }
  0x30   : > { %s52_s28 = sadd.s32 1, %s1037_s20  ;;  %s41_s30 = sadd.s32 1, %s1045_s22 }
  0x31   : > { %p59_p1 = scmp.ne.s32.totalorder %s1037_s20, %s1033_s19  ;;  %p43_p2 = scmp.ge.s32.totalorder %s41_s30, 2 }
  0x32   : > { %p60_p4 = scmp.eq.s32.totalorder %s1049_s23, 0  ;;  %p1406_p6 = scmp.eq.s32.totalorder %s1122_s24, 1 }
  0x33   : > { %p768_p10 = scmp.lt.s32.totalorder %s1049_s23, 2  ;;  %s1430_s30 = smov (%p43_p2, %s41_s30), 0 }
  0x34   : > { %p1194_p8 = por %p1406_p6, %p59_p1  ;;  %1408 = sst [smem:[#allocation19_spill]] %s1430_s30 }
  0x35   : > { %p61_p12 = por %p60_p4, %p59_p1  ;;  %s245_s8 = sand.u32 1, %s1049_s23  }
  0x36   : > { %s1407_s6 = scalar_select %p1194_p8, 1, 0 }
  0x37   : > { %s45_s10 = ssub.s32 %s1045_s22, %s1430_s30  ;;  %s247_s7 = sand.u32 1, %s1037_s20  }
  0x38   : > { %p50_p11 = scmp.eq.s32.totalorder %s45_s10, 0  ;;  %s1205_s9 = sshll.u32 %s247_s7, 2 }
  0x39   : > { %s678_s12 = sshll.u32 %s1045_s22, 6  ;;  %s1410_s0 = sld [smem:[#allocation21_spill]] }
  0x3a   : > { %s1209_s13 = scalar_select %p50_p11, %s1037_s20, %s52_s28  }
  0x3b   : > { %s249_s17 = scalar_lea.vmem [#allocation4], %s1205_s9  ;;  %p1219_p0 = pnand %p768_p10, %p61_p12 }
  0x3c   : > { %1409 = sst [smem:[#allocation20_spill]] %s1209_s13  ;;  %s258_s25 = sshll.u32 %s249_s17, 4  ;;  %s1223_s25 = int_to_ptr.vmem [resolvable:$true] %s258_s25 }
  0x3d   : > { %s1411_s10 = scalar_select %p1219_p0, 1, 0 }
  0x3e   : > { %s1228_s14 = scalar_lea.hbm %s1380_s2, %s678_s12  ;;  %s1230_s15 = scalar_lea.sflag [#allocation5], %s245_s8 }
  0x3f   : > { %s1214_s16 = scalar_lea.hbm %s1410_s0, %s678_s12  ;;  %p1392_p13 = pneg %p1219_p0 }
  0x40   : > { %s867_s1 = scalar_lea.hbm %s1214_s16, 64  ;;  %s872_s22 = scalar_lea.hbm %s1410_s0, 128 }
  0x41   : > { %p868_p5 = scmp.ne.s32.totalorder %s1214_s16, %s867_s1  ;;  %p873_p9 = scmp.lt.u32.totalorder %s1214_s16, %s1410_s0 }
  0x42   : > { %p874_p1 = scmp.lt.u32.totalorder %s872_s22, %s867_s1  ;;  %p876_p4 = scmp.lt.u32.totalorder %s867_s1, %s1214_s16 }
  0x43   : > { %p870_p3 = pnand %p1392_p13, %p868_p5 }
  0x44   : > { %p875_p2 = por %p874_p1, %p873_p9 }
  0x45   : > { %p871_p7 = pneg %p870_p3 }
  0x46   : > { %p877_p6 = por %p876_p4, %p875_p2 }
  0x48   : > { %p878_p10 = pnand %p877_p6, %p871_p7 }
  0x4a   : > { %881 = shalt.err (!%p878_p10)
}
  0x4b   : > { %s882_s8 = scalar_lea.vmem %s1223_s25, 64  ;;  %s1052_s30 = smov [#allocation4]  }
  0x4c   : > { %p883_p12 = scmp.ne.s32.totalorder %s1223_s25, %s882_s8  ;;  %s887_s12 = sshll.u32 %s1052_s30, 4  ;;  %s888_s12 = int_to_ptr.vmem [resolvable:$false] %s887_s12 }
  0x4d   : > { %s889_s20 = scalar_lea.vmem %s888_s12, 128  ;;  %p890_p3 = scmp.lt.s32.totalorder %s1223_s25, %s888_s12 }
  0x4e   : > { %p885_p11 = pnand %p883_p12, %p1392_p13  ;;  %p891_p9 = scmp.lt.s32.totalorder %s889_s20, %s882_s8 }
  0x50   : > { %p886_p5 = pneg %p885_p11  ;;  %p892_p1 = por %p891_p9, %p890_p3 }
  0x52   : > { %p893_p2 = pnand %p892_p1, %p886_p5 }
  0x54   : > { %896 = shalt.err (!%p893_p2)
}
  0x55   : > { %759 = dma.hbm_to_vmem [thread:$0]  (!%p1219_p0), %s1214_s16, 64, %s1223_s25, %s1230_s15  }
  0x56   : > { %s1053_s1 = smov [#allocation10]   ;;  %s269_s13 = scalar_lea.vmem [#allocation9], %s1205_s9 }
  0x57   : > { %s228_s22 = sshll.u32 %s1053_s1, 4  ;;  %s277_s28 = sshll.u32 %s269_s13, 4  ;;  %s229_s22 = int_to_ptr.vmem [resolvable:$true] %s228_s22  ;;  %s278_s28 = int_to_ptr.vmem [resolvable:$true] %s277_s28 }
  0x58   : > { %s897_s8 = scalar_lea.hbm %s1381_s3, 1024  ;;  %p1412_p4 = scmp.ne.s32.totalorder %s1405_s11, 0 }
  0x59   : > { %p898_p7 = scmp.ne.s32.totalorder %s1381_s3, %s897_s8  ;;  %p904_p11 = scmp.lt.u32.totalorder %s897_s8, %s1381_s3 }
  0x5a   : > { %p899_p6 = pneg %p1412_p4 }
  0x5c   : > { %p900_p10 = pnand %p899_p6, %p898_p7 }
  0x5e   : > { %p901_p12 = pneg %p900_p10 }
  0x60   : > { %p906_p5 = pnand %p904_p11, %p901_p12 }
  0x62   : > { %909 = shalt.err (!%p906_p5)
}
  0x63   : > { %s910_s9 = scalar_lea.vmem %s229_s22, 1024  ;;  %p918_p2 = scmp.lt.s32.totalorder %s229_s22, %s229_s22 }
  0x64   : > { %p911_p3 = scmp.ne.s32.totalorder %s229_s22, %s910_s9  ;;  %p919_p13 = scmp.lt.s32.totalorder %s910_s9, %s910_s9 }
  0x66   : > { %p913_p9 = pnand %p911_p3, %p899_p6  ;;  %p920_p8 = por %p919_p13, %p918_p2 }
  0x68   : > { %p914_p1 = pneg %p913_p9 }
  0x6a   : > { %p921_p0 = pnand %p920_p8, %p914_p1 }
  0x6c   : > { %924 = shalt.err (!%p921_p0)
}
  0x6d   : > { %s1054_s16 = smov 64   ;;  %s1055_s0 = smov 4  }
  0x6e   : > { %755 = dma.hbm_to_vmem [thread:$0]  (!%p1412_p4), %s1381_s3, 1024, %s229_s22, [#allocation8], %s1054_s16, %s1054_s16, %s1055_s0  }
  0x6f   : > { %s925_s13 = scalar_lea.hbm %s1228_s14, 64  ;;  %p1413_p6 = scmp.ne.s32.totalorder %s1411_s10, 0 }
  0x70   : > { %p926_p7 = scmp.ne.s32.totalorder %s1228_s14, %s925_s13  ;;  %s930_s8 = scalar_lea.hbm %s1380_s2, 128 }
  0x71   : > { %p1414_p13 = pneg %p1413_p6  ;;  %p931_p10 = scmp.lt.u32.totalorder %s1228_s14, %s1380_s2 }
  0x72   : > { %p932_p12 = scmp.lt.u32.totalorder %s930_s8, %s925_s13  ;;  %p934_p5 = scmp.lt.u32.totalorder %s925_s13, %s1228_s14 }
  0x73   : > { %p928_p8 = pnand %p926_p7, %p1414_p13 }
  0x74   : > { %p933_p11 = por %p932_p12, %p931_p10 }
  0x75   : > { %p929_p0 = pneg %p928_p8 }
  0x76   : > { %p935_p3 = por %p934_p5, %p933_p11 }
  0x78   : > { %p936_p4 = pnand %p935_p3, %p929_p0 }
  0x7a   : > { %939 = shalt.err (!%p936_p4)
}
  0x7b   : > { %s940_s11 = scalar_lea.vmem %s278_s28, 64  ;;  %p1415_p1 = pmov %p1414_p13 }
  0x7c   : > { %p941_p9 = scmp.ne.s32.totalorder %s278_s28, %s940_s11  ;;  %s1056_s22 = smov [#allocation9]  }
  0x7d   : > { %s945_s20 = sshll.u32 %s1056_s22, 4  ;;  %s946_s20 = int_to_ptr.vmem [resolvable:$false] %s945_s20 }
  0x7e   : > { %p943_p2 = pnand %p941_p9, %p1415_p1  ;;  %s947_s9 = scalar_lea.vmem %s946_s20, 128 }
  0x7f   : > { %p948_p13 = scmp.lt.s32.totalorder %s278_s28, %s946_s20  ;;  %p949_p8 = scmp.lt.s32.totalorder %s947_s9, %s940_s11 }
  0x80   : > { %p944_p7 = pneg %p943_p2 }
  0x81   : > { %p950_p10 = por %p949_p8, %p948_p13 }
  0x83   : > { %p951_p12 = pnand %p950_p10, %p944_p7 }
  0x85   : > { %954 = shalt.err (!%p951_p12)
}
  0x86   : > { %762 = dma.hbm_to_vmem [thread:$0]  (!%p1413_p6), %s1228_s14, 64, %s278_s28, %s1230_s15  }
  0x87   : > { %p1416_p0 = scmp.ne.s32.totalorder %s1402_s29, 0 }
  0x88   : > { %s288_s16 = sand.u32 (!%p1416_p0), 1, %s1122_s24   ;;  %s1299_s0 = sand.u32 (!%p1416_p0), 1, %s1033_s19  }
  0x89   : > { %286 = sbr.rel (%p1416_p0) target bundleno = 747 (0x2eb), region = 40  ;;  %s682_s25 = sshll.u32 (!%p1416_p0), %s1299_s0, 2 }
  0x8a   : > { %s289_s1 = scalar_lea.sflag (!%p1416_p0), [#allocation5], %s288_s16  ;;  %s292_s13 = scalar_lea.vmem (!%p1416_p0), [#allocation4], %s682_s25 }
  0x8b   : > { %p1417_p11 = scmp.ne.s32.totalorder (!%p1416_p0), %s1400_s26, 0 }
  0x90   : > { %1008 = dma.done.wait (%p1417_p11), %s289_s1, 64  }
  0x91   : > { %1010 = vsyncadd (%p1417_p11), %s289_s1, 4294967232 }
  0x92   : > { %1012 = dma.done.wait (%p1417_p11), [#allocation8], 64  }
  0x93   : > { %1014 = vsyncadd (%p1417_p11), [#allocation8], 4294967232  ;;  %s1310_s29 = scalar_lea.vmem [#allocation9], %s682_s25 }
  0x94   : > { %1016 = dma.done.wait (%p1417_p11), %s289_s1, 64  }
  0x95   : > { %1018 = vsyncadd (%p1417_p11), %s289_s1, 4294967232  ;;  %p1418_p6 = scmp.eq.s32.totalorder %s1122_s24, 0 }
  0x97   : > { %1020 = dma.done.wait (%p1418_p6), [#allocation8], 1024   ;;  %p1419_p5 = pmov %p1418_p6 }
  0x98   : > { %v1057_v0 = vmov 0.0   ;;  %vm1058_vm0 = vmmov 0   ;;  %vm354_vm1 = vcmask 1043456   ;;  %v349_v1 = vld [vmem:[#allocation7] sm:$0xf]  ;;  %vm350_vm2 = vcmask 64512  }
  0x99   : > { %1022 = vsyncadd (%p1419_p5), [#allocation8], 4294966272  ;;  %711 = vmatprep.subr.bf16.mxu0 %v1057_v0  ;;  %713 = vmatprep.mubr.msk.bf16.mxu0 %vm1058_vm0, %v1057_v0  ;;  %v347_v2 = vld [vmem:[%s292_s13] sm:$0xf]  ;;  %v356_v3 = vsel %vm354_vm1, %v349_v1, 0  ;;  %v1059_v4 = vmov 32  }
  0x9a   : > { %717 = vmatprep.subr.bf16.mxu1 %v1057_v0  ;;  %733 = vmatprep.mubr.msk.bf16.mxu1 %vm1058_vm0, %v1057_v0  ;;  %v827_v5 = vld [vmem:[#allocation10] sm:$0xff]   ;;  %v828_v6 = vld [vmem:[#allocation10 + $0x8] sm:$0xff]   ;;  %v829_v7 = vld [vmem:[#allocation10 + $0x10] sm:$0xff]   ;;  %s685_s24 = sshll.u32 %s1299_s0, 3  ;;  %s697_s14 = sshll.u32 %s1041_s21, 7 }
  0x9b   : > { %712 = vmatpush3.bf16.msra.mxu0 %v356_v3  ;;  %826 = vset.pattern.permute.xlu0 %v1059_v4  ;;  %v830_v8 = vld [vmem:[#allocation10 + $0x18] sm:$0xff]   ;;  %v831_v9 = vld [vmem:[#allocation10 + $0x20] sm:$0xff]   ;;  %v832_v10 = vld [vmem:[#allocation10 + $0x28] sm:$0xff]   ;;  %s340_s15 = scalar_lea.vmem [#allocation11], %s685_s24  ;;  %s1329_s8 = scalar_lea.hbm %s1383_s5, %s697_s14 }
  0x9c   : > { %718 = vmatpush3.bf16.msra.mxu1 %v827_v5  ;;  %v833_v11 = vld [vmem:[#allocation10 + $0x30] sm:$0xff]   ;;  %v834_v18 = vld [vmem:[#allocation10 + $0x38] sm:$0xff]   ;;  %v687_v25 = vld [vmem:[%s1382_s4] ss:$0 sm:$0xff]  ;;  %s544_s28 = sshll.u32 %s340_s15, 4  ;;  %s530_s30 = scalar_lea.sflag [#allocation6], %s1299_s0  ;;  %s1331_s28 = int_to_ptr.vmem [resolvable:$true] %s544_s28 }
  0x9d   : > { %719 = vmatprep.subr.bf16.mxu1 %v1057_v0  ;;  %v412_v19 = vld [vmem:[%s1310_s29] sm:$0xf]  ;;  %s955_s21 = scalar_lea.vmem %s1331_s28, 128  ;;  %p1420_p4 = scmp.ne.s32.totalorder %s1407_s6, 0 }
  0x9e   : > { %714 = vmatmul.mubr.msk.bf16.vlgmr.msra.gmra.mrb[0].mxu0 %vm350_vm2, %v347_v2  ;;  %v413_v20 = vunpack.c.l.bf16 %v412_v19  ;;  %p956_p3 = scmp.ne.s32.totalorder %s1331_s28, %s955_s21  ;;  %s1060_s12 = smov [#allocation11]  }
  0x9f   : > { %s959_s11 = sshll.u32 %s1060_s12, 4  ;;  %s960_s11 = int_to_ptr.vmem [resolvable:$false] %s959_s11 }
  0xa0   : > { %720 = vmatpush3.bf16.msra.mxu1 %v828_v6  ;;  %p957_p9 = pnand %p956_p3, %p1420_p4  ;;  %s961_s22 = scalar_lea.vmem %s960_s11, 256 }
  0xa1   : > { %721 = vmatprep.subr.bf16.mxu1 %v1057_v0  ;;  %p962_p2 = scmp.lt.s32.totalorder %s1331_s28, %s960_s11  ;;  %p963_p7 = scmp.lt.s32.totalorder %s961_s22, %s955_s21 }
  0xa2   : > { %p958_p1 = pneg %p957_p9 }
  0xa3   : > { %p964_p13 = por %p963_p7, %p962_p2 }
  0xa4   : > { %722 = vmatpush3.bf16.msra.mxu1 %v829_v7 }
  0xa5   : > { %723 = vmatprep.subr.bf16.mxu1 %v1057_v0  ;;  %p965_p8 = pnand %p964_p13, %p958_p1 }
  0xa8   : > { %724 = vmatpush3.bf16.msra.mxu1 %v830_v8 }
  0xa9   : > { %725 = vmatprep.subr.bf16.mxu1 %v1057_v0 }
  0xac   : > { %726 = vmatpush3.bf16.msra.mxu1 %v831_v9 }
  0xad   : > { %727 = vmatprep.subr.bf16.mxu1 %v1057_v0 }
  0xb0   : > { %728 = vmatpush3.bf16.msra.mxu1 %v832_v10 }
  0xb1   : > { %729 = vmatprep.subr.bf16.mxu1 %v1057_v0 }
  0xb4   : > { %730 = vmatpush3.bf16.msra.mxu1 %v833_v11 }
  0xb5   : > { %731 = vmatprep.subr.bf16.mxu1 %v1057_v0 }
  0xb8   : > { %732 = vmatpush3.bf16.msra.mxu1 %v834_v18 }
 0x171   : > { %v392_v12 = vpop.f32.mrb[0].mxu0 }
 0x172   : > { %v404_v13 = vadd.f32 1e-06, %v392_v12  ;;  %v715_v14 = vpop.f32.mrb[1].mxu0 }
 0x173   : > { %v395_v15 = vpop.f32.mrb[2].mxu0 }
 0x174   : > { %835 = vrcp.f32 %v404_v13  ;;  %v716_v16 = vpop.f32.mrb[3].mxu0 }
 0x17e   : > { %v836_v17 = vpop.eup %835 }
 0x17f   : > { %408 = vperm.xlu0 %826, %v836_v17  }
 0x1fe   : > { %v409_v21 = vpop.permute.xlu0 %408 }
 0x1ff   : > { %v411_v22 = vmul.f32 %v409_v21, %v392_v12 }
 0x201   : > { %v414_v23 = vadd.f32 %v413_v20, %v411_v22 }
 0x203   : > { %v415_v24 = vpack.c.bf16 %v414_v23, %v414_v23 }
 0x205   : > { %734 = vmatmul.mubr.bf16.vlgmr.msra.gmra.mrb[0].mxu1 %v415_v24 }
 0x2d8   : > { %v521_v26 = vpop.f32.mrb[0].mxu1 }
 0x2d9   : > { %v522_v27 = vadd.f32 %v687_v25, %v521_v26  ;;  %v735_v28 = vpop.f32.mrb[1].mxu1 }
 0x2da   : > { %v524_v29 = vpop.f32.mrb[2].mxu1 }
 0x2db   : > { %v527_v30 = vmax.f32 %v522_v27, 0.0  ;;  %v736_v31 = vpop.f32.mrb[3].mxu1 }
 0x2dd   : > { %528 = vst [vmem:[%s340_s15] sm:$0xff] %v527_v30 }
 0x2de   : > { %968 = shalt.err (!%p965_p8)
}
 0x2df   : > { %s969_s20 = scalar_lea.hbm %s1329_s8, 128  ;;  %s973_s0 = scalar_lea.hbm %s1383_s5, 256 }
 0x2e0   : > { %p970_p10 = scmp.ne.s32.totalorder %s1329_s8, %s969_s20  ;;  %p974_p11 = scmp.lt.u32.totalorder %s1329_s8, %s1383_s5 }
 0x2e1   : > { %p975_p6 = scmp.lt.u32.totalorder %s973_s0, %s969_s20  ;;  %p977_p3 = scmp.lt.u32.totalorder %s969_s20, %s1329_s8 }
 0x2e2   : > { %p971_p12 = pnand %p970_p10, %p1420_p4 }
 0x2e3   : > { %p976_p5 = por %p975_p6, %p974_p11 }
 0x2e4   : > { %p972_p0 = pneg %p971_p12 }
 0x2e5   : > { %p978_p9 = por %p977_p3, %p976_p5 }
 0x2e7   : > { %p979_p1 = pnand %p978_p9, %p972_p0 }
 0x2e9   : > { %982 = shalt.err (!%p979_p1)
}
 0x2ea   : > { %747 = dma.vmem_to_hbm [thread:$0]  (%p1420_p4), %s1331_s28, 128, %s1329_s8, %s530_s30  }
 0x2eb PF: > { %s556_s13 = sand.u32 1, %s1029_s18   ;;  %p1421_p2 = scmp.ne.s32.totalorder %s1401_s27, 0 }
 0x2ec   : > { %p1422_p7 = scmp.ge.s32.totalorder %s1049_s23, 2  ;;  %s557_s29 = scalar_lea.sflag [#allocation6], %s556_s13 }
 0x2ee   : > { %p764_p13 = pnand %p1422_p7, %p1421_p2 }
 0x2f0   : > { %1024 = dma.done.wait (!%p764_p13), %s557_s29, 128  }
 0x2f1   : > { %1026 = vsyncadd (!%p764_p13), %s557_s29, 4294967168  ;;  %s22_s23 = sadd.s32 1, %s1049_s23   ;;  %s1423_s24 = sld [smem:[#allocation17_spill]] }
 0x2f2   : > { %p19_p8 = scmp.ge.s32.totalorder %s22_s23, 4   ;;  %s1424_s20 = sld [smem:[#allocation20_spill]] }
 0x2f3   : > { %s1425_s21 = sld [smem:[#allocation18_spill]]  ;;  %s1426_s22 = sld [smem:[#allocation19_spill]] }
 0x2f4   : > { %s1427_s18 = smov %s1033_s19  ;;  %21 = sbr.rel (!%p19_p8) target bundleno = 10 (0xa), region = 113 }
 0x2f7   : > { %s1428_s19 = smov %s1423_s24 }
 0x2fb   :  { %562 = vsyncpa [#allocation5], 1 }
 0x2fc   :  { %564 = vsyncpa [#allocation5 + $0x1], 1 }
 0x2fd   :  { %565 = vsyncpa [#allocation8], 1 }
 0x2fe   :  { %566 = vsyncpa [#allocation6], 1 }
 0x2ff   :  { %568 = vsyncpa [#allocation6 + $0x1], 1 }

</bundles_post_ra>
